<compile_context>
chip_gen: v6e
topology: v6e:2x2x1
jax: 0.10.0
libtpu: 0.0.40
codegen_flags: <defaults>
</compile_context>

<pallas_src>
import jax
import jax.numpy as jnp
from jax.experimental import pallas as pl
from jax.experimental.pallas import tpu as pltpu


# ----------------------------------------------------------------------------
# Pallas kernel + wrapper: rows = flattened (B*R) relations, gridded in tiles
# ----------------------------------------------------------------------------
def re_decoder_pallas(params, head_repr, tail_repr, labels):
    """head_repr / tail_repr: (B, R, 2H) bf16; labels: (B, R) int32.

    Returns (logits (B, R, L) float32, loss scalar float32) where
    loss == sum_b mean_r CE(logits[b, r], labels[b, r])  (matches the module).
    """
    B, R, twoH = head_repr.shape
    H = params["w1h"].shape[1]
    Hh = params["w2h"].shape[1]
    L = params["blin"].shape[-1]

    rows = B * R
    TM = min(128, ((rows + 7) // 8) * 8)          # full MXU row tile at scale
    rows_pad = ((rows + TM - 1) // TM) * TM
    num_tiles = rows_pad // TM
    pad = rows_pad - rows
    n_valid = rows

    hr = jnp.pad(head_repr.reshape(rows, twoH), ((0, pad), (0, 0)))
    tr = jnp.pad(tail_repr.reshape(rows, twoH), ((0, pad), (0, 0)))
    # Lane-aligned one-hot labels (padding rows are all-zero -> masked later).
    onehot = jnp.pad(jax.nn.one_hot(labels.reshape(rows), L, dtype=jnp.float32),
                     ((0, pad), (0, 0)))
    # Block-sum selector for the fused bilinear: sel[j, k] = 1 iff j // Hh == k.
    sel = (jnp.arange(L * Hh)[:, None] // Hh
           == jnp.arange(L)[None, :]).astype(jnp.float32)

    def kernel(hr_ref, tr_ref, oh_ref,
               w1h_ref, b1h_ref, w2h_ref, b2h_ref,
               w1t_ref, b1t_ref, w2t_ref, b2t_ref,
               wbil_ref, wlh_ref, wlt_ref, blin_ref, sel_ref,
               logits_ref, loss_ref):
        f32 = jnp.float32
        bf16 = jnp.bfloat16

        # ffnn_head / ffnn_tail: Linear -> ReLU -> (Dropout=id) -> Linear -> ReLU
        def ffnn(x_ref, w1_ref, b1_ref, w2_ref, b2_ref):
            h = jnp.maximum(
                jnp.dot(x_ref[...], w1_ref[...], preferred_element_type=f32)
                + b1_ref[...], 0.0)
            return jnp.maximum(
                jnp.dot(h.astype(bf16), w2_ref[...], preferred_element_type=f32)
                + b2_ref[...], 0.0)

        heads = ffnn(hr_ref, w1h_ref, b1h_ref, w2h_ref, b2h_ref)   # (TM, Hh) f32
        tails = ffnn(tr_ref, w1t_ref, b1t_ref, w2t_ref, b2t_ref)   # (TM, Hh) f32
        heads_bf = heads.astype(bf16)
        tails_bf = tails.astype(bf16)

        # Fused bilinear: one lane-dense MXU matmul + block-sum selector matmul.
        u = jnp.dot(heads_bf, wbil_ref[...], preferred_element_type=f32)  # (TM, L*Hh)
        tails_rep = jnp.concatenate([tails] * L, axis=1)                  # (TM, L*Hh)
        bil = jnp.dot(u * tails_rep, sel_ref[...],
                      preferred_element_type=f32)                        # (TM, L)

        # Biaffine linear split into head/tail halves (no lane concat).
        logits = (bil
                  + jnp.dot(heads_bf, wlh_ref[...], preferred_element_type=f32)
                  + jnp.dot(tails_bf, wlt_ref[...], preferred_element_type=f32)
                  + blin_ref[...])                                        # (TM, L)
        logits_ref[...] = logits

        # Cross entropy: sum over this tile's valid rows (the /R is outside).
        m = jnp.max(logits, axis=-1, keepdims=True)
        z = logits - m
        lse = jnp.log(jnp.sum(jnp.exp(z), axis=-1, keepdims=True))
        tgt = jnp.sum(z * oh_ref[...], axis=-1, keepdims=True)
        ce = lse - tgt                                                    # (TM, 1)
        row = (pl.program_id(0) * TM
               + jax.lax.broadcasted_iota(jnp.int32, (TM, 1), 0))
        valid = (row < n_valid).astype(f32)
        loss_ref[...] = jnp.sum(ce * valid).reshape(1, 1, 1)

    const = lambda t: (0, 0)
    grid_spec = pltpu.PrefetchScalarGridSpec(
        num_scalar_prefetch=0,
        grid=(num_tiles,),
        in_specs=[
            pl.BlockSpec((TM, twoH), lambda t: (t, 0)),     # head reprs (bf16)
            pl.BlockSpec((TM, twoH), lambda t: (t, 0)),     # tail reprs (bf16)
            pl.BlockSpec((TM, L), lambda t: (t, 0)),        # label one-hot (f32)
            pl.BlockSpec((twoH, H), const),                 # w1h
            pl.BlockSpec((1, H), const),                    # b1h
            pl.BlockSpec((H, Hh), const),                   # w2h
            pl.BlockSpec((1, Hh), const),                   # b2h
            pl.BlockSpec((twoH, H), const),                 # w1t
            pl.BlockSpec((1, H), const),                    # b1t
            pl.BlockSpec((H, Hh), const),                   # w2t
            pl.BlockSpec((1, Hh), const),                   # b2t
            pl.BlockSpec((Hh, L * Hh), const),              # wbil2d
            pl.BlockSpec((Hh, L), const),                   # wlin_h
            pl.BlockSpec((Hh, L), const),                   # wlin_t
            pl.BlockSpec((1, L), const),                    # blin
            pl.BlockSpec((L * Hh, L), const),               # selector
        ],
        out_specs=[
            pl.BlockSpec((TM, L), lambda t: (t, 0)),        # logits (rows_pad, L)
            pl.BlockSpec((1, 1, 1), lambda t: (t, 0, 0)),   # per-tile CE sum
        ],
    )
    out_shapes = (
        jax.ShapeDtypeStruct((rows_pad, L), jnp.float32),
        jax.ShapeDtypeStruct((num_tiles, 1, 1), jnp.float32),
    )
    logits_flat, loss_tiles = pl.pallas_call(
        kernel,
        grid_spec=grid_spec,
        out_shape=out_shapes,
        compiler_params=pltpu.CompilerParams(
            dimension_semantics=("parallel",)),
    )(hr, tr, onehot,
      params["w1h"], params["b1h"], params["w2h"], params["b2h"],
      params["w1t"], params["b1t"], params["w2t"], params["b2t"],
      params["wbil2d"], params["wlin_h"], params["wlin_t"], params["blin"],
      sel)

    logits = logits_flat[:rows].reshape(B, R, L)
    loss = jnp.sum(loss_tiles) / R     # == sum_b mean_r CE  (R relations/batch)
    return logits, loss


# ----------------------------------------------------------------------------
# Glue: batched entity/relation gathers (index-select + embedding + concat)
# ----------------------------------------------------------------------------
def build_reprs(params, hidden_states, entities, relations):
    # TODO(synk): ragged per-batch entity/relation lists (unequal counts) would
    # need host-side padding + a validity mask; this fixture uses equal counts.
    head_e = jnp.asarray([r["head"] for r in relations], dtype=jnp.int32)   # (B,R)
    tail_e = jnp.asarray([r["tail"] for r in relations], dtype=jnp.int32)
    labels = jnp.asarray([r["label"] for r in relations], dtype=jnp.int32)
    e_start = jnp.asarray([e["start"] for e in entities], dtype=jnp.int32)  # (B,E)
    e_label = jnp.asarray([e["label"] for e in entities], dtype=jnp.int32)

    head_index = jnp.take_along_axis(e_start, head_e, axis=1)
    head_label = jnp.take_along_axis(e_label, head_e, axis=1)
    tail_index = jnp.take_along_axis(e_start, tail_e, axis=1)
    tail_label = jnp.take_along_axis(e_label, tail_e, axis=1)

    emb = params["entity_emb"]                                             # (3,H)
    head_tok = jnp.take_along_axis(hidden_states, head_index[..., None], axis=1)
    tail_tok = jnp.take_along_axis(hidden_states, tail_index[..., None], axis=1)
    head_repr = jnp.concatenate([head_tok, emb[head_label]], -1).astype(jnp.bfloat16)
    tail_repr = jnp.concatenate([tail_tok, emb[tail_label]], -1).astype(jnp.bfloat16)
    return head_repr, tail_repr, labels


def get_predicted_relations(pred_labels, relations_b, entities_b):
    out = []
    for i, lab in enumerate(pred_labels):
        rel = {}
        rel["head_id"] = relations_b["head"][i]
        rel["head"] = (entities_b["start"][rel["head_id"]],
                       entities_b["end"][rel["head_id"]])
        rel["head_type"] = entities_b["label"][rel["head_id"]]
        rel["tail_id"] = relations_b["tail"][i]
        rel["tail"] = (entities_b["start"][rel["tail_id"]],
                       entities_b["end"][rel["tail_id"]])
        rel["tail_type"] = entities_b["label"][rel["tail_id"]]
        rel["type"] = int(lab)
        out.append(rel)
    return out


def relation_extraction_decoder_forward(params, hidden_states, entities, relations):
    head_repr, tail_repr, labels = build_reprs(
        params, hidden_states, entities, relations)
    logits, loss = re_decoder_pallas(params, head_repr, tail_repr, labels)
    # Argmax over the tiny label axis in plain JAX on the kernel's logits
    # output (removes the lane-width-1 preds store from the kernel; matches
    # torch.argmax first-max tie-breaking).
    preds = jnp.argmax(logits, axis=-1)
    preds_host = jax.device_get(preds)
    all_pred_relations = []
    for b in range(hidden_states.shape[0]):
        all_pred_relations.append(
            get_predicted_relations(preds_host[b], relations[b], entities[b]))
    return loss, all_pred_relations, logits


# ----------------------------------------------------------------------------
# Deterministic parameter init (shapes from the module's __init__)
# ----------------------------------------------------------------------------
def init_params(key, hidden_size, num_labels):
    H = hidden_size
    Hh = H // 2
    L = num_labels
    ks = jax.random.split(key, 8)

    def lin(kw, kb, fan_in, fan_out):
        scale = 1.0 / jnp.sqrt(jnp.float32(fan_in))
        w = jax.random.uniform(kw, (fan_in, fan_out), jnp.float32, -scale, scale)
        b = jax.random.uniform(kb, (1, fan_out), jnp.float32, -scale, scale)
        return w, b

    w1h, b1h = lin(ks[0], ks[1], 2 * H, H)
    w2h, b2h = lin(ks[2], ks[3], H, Hh)
    # ffnn_tail is a deepcopy of the same projection => identical initial weights
    w1t, b1t = w1h, b1h
    w2t, b2t = w2h, b2h
    entity_emb = jax.random.normal(ks[4], (3, H), jnp.float32)
    wbil = jax.random.normal(ks[5], (L, Hh, Hh), jnp.float32) / Hh
    wlin, blin = lin(ks[6], ks[7], 2 * Hh, L)

    # Host-side layout prep for the kernel:
    #  * bilinear weight reshaped to (Hh, L*Hh) (wbil2d[p, k*Hh+q] = wbil[k,p,q])
    #  * biaffine linear split so the kernel never concatenates heads/tails
    #  * MXU weights stored in bf16 (halves HBM traffic); biases stay f32.
    wbil2d = jnp.transpose(wbil, (1, 0, 2)).reshape(Hh, L * Hh)
    bf = jnp.bfloat16
    return dict(
        entity_emb=entity_emb,
        w1h=w1h.astype(bf), b1h=b1h, w2h=w2h.astype(bf), b2h=b2h,
        w1t=w1t.astype(bf), b1t=b1t, w2t=w2t.astype(bf), b2t=b2t,
        wbil2d=wbil2d.astype(bf),
        wlin_h=wlin[:Hh].astype(bf), wlin_t=wlin[Hh:].astype(bf), blin=blin,
    )


# ----------------------------------------------------------------------------
# Pure-JAX reference of the same math (for correctness check)
# ----------------------------------------------------------------------------
def reference_forward(params, head_repr, tail_repr, labels):
    f32 = jnp.float32
    bf16 = jnp.bfloat16
    Hh = params["w2h"].shape[1]
    L = params["blin"].shape[-1]

    def ffnn(x, w1, b1, w2, b2):
        h = jnp.maximum(jnp.dot(x, w1, preferred_element_type=f32) + b1, 0.0)
        return jnp.maximum(
            jnp.dot(h.astype(bf16), w2, preferred_element_type=f32) + b2, 0.0)

    heads = ffnn(head_repr, params["w1h"], params["b1h"],
                 params["w2h"], params["b2h"])
    tails = ffnn(tail_repr, params["w1t"], params["b1t"],
                 params["w2t"], params["b2t"])
    hb = heads.astype(bf16)
    tb = tails.astype(bf16)

    u = jnp.dot(hb, params["wbil2d"], preferred_element_type=f32)   # (B,R,L*Hh)
    B, R = u.shape[:2]
    bil = jnp.einsum("brkq,brq->brk", u.reshape(B, R, L, Hh), tails)
    logits = (bil
              + jnp.dot(hb, params["wlin_h"], preferred_element_type=f32)
              + jnp.dot(tb, params["wlin_t"], preferred_element_type=f32)
              + params["blin"])
    logp = jax.nn.log_softmax(logits, axis=-1)
    nll = -jnp.take_along_axis(logp, labels[..., None], axis=-1)[..., 0]
    loss = jnp.sum(jnp.mean(nll, axis=-1))
    return logits, loss


if __name__ == "__main__":
    B, T, H, L = 2, 16, 32, 2   # batch, max_n_words, hidden_size, num_labels
    key = jax.random.PRNGKey(0)
    kp, kh = jax.random.split(key)
    params = init_params(kp, H, L)
    hidden_states = jax.random.normal(kh, (B, T, H), jnp.float32)

    entities = [
        {"start": [0, 3, 7, 11], "end": [2, 6, 10, 15], "label": [1, 2, 1, 2]},
        {"start": [1, 4, 8, 12], "end": [3, 7, 11, 14], "label": [2, 1, 2, 1]},
    ]
    relations = [
        {"head": [0, 0, 1, 1, 2, 2, 3, 3], "tail": [1, 2, 0, 3, 1, 3, 0, 2],
         "label": [1, 0, 1, 0, 0, 1, 0, 1]},
        {"head": [0, 1, 2, 3, 0, 1, 2, 3], "tail": [3, 2, 1, 0, 1, 3, 0, 2],
         "label": [0, 1, 0, 1, 1, 0, 1, 0]},
    ]

    loss, all_pred_relations, logits = relation_extraction_decoder_forward(
        params, hidden_states, entities, relations)
    jax.block_until_ready((loss, logits))

    # correctness check vs pure-JAX reference (same bf16 operand rounding)
    head_repr, tail_repr, labels = build_reprs(
        params, hidden_states, entities, relations)
    ref_logits, ref_loss = reference_forward(params, head_repr, tail_repr, labels)
    assert jnp.allclose(logits, ref_logits, atol=2e-3, rtol=2e-3), "logits mismatch"
    assert jnp.allclose(loss, ref_loss, atol=2e-3, rtol=2e-3), "loss mismatch"
    assert len(all_pred_relations) == B and len(all_pred_relations[0]) == 8

    print("KERNEL_OK")
</pallas_src>

<mosaic_0001>
module attributes {stable_mosaic.version = 11 : i64} {
  func.func @kernel(%arg0: i32, %arg1: memref<16x64xbf16, #tpu.memory_space<vmem>>, %arg2: memref<16x64xbf16, #tpu.memory_space<vmem>>, %arg3: memref<16x2xf32, #tpu.memory_space<vmem>>, %arg4: memref<64x32xbf16, #tpu.memory_space<vmem>>, %arg5: memref<1x32xf32, #tpu.memory_space<vmem>>, %arg6: memref<32x16xbf16, #tpu.memory_space<vmem>>, %arg7: memref<1x16xf32, #tpu.memory_space<vmem>>, %arg8: memref<64x32xbf16, #tpu.memory_space<vmem>>, %arg9: memref<1x32xf32, #tpu.memory_space<vmem>>, %arg10: memref<32x16xbf16, #tpu.memory_space<vmem>>, %arg11: memref<1x16xf32, #tpu.memory_space<vmem>>, %arg12: memref<16x32xbf16, #tpu.memory_space<vmem>>, %arg13: memref<16x2xbf16, #tpu.memory_space<vmem>>, %arg14: memref<16x2xbf16, #tpu.memory_space<vmem>>, %arg15: memref<1x2xf32, #tpu.memory_space<vmem>>, %arg16: memref<32x2xf32, #tpu.memory_space<vmem>>, %arg17: memref<16x2xf32, #tpu.memory_space<vmem>>, %arg18: memref<1x1x1xf32, #tpu.memory_space<vmem>>) attributes {dimension_semantics = [#tpu.dimension_semantics<parallel>], iteration_bounds = array<i64: 1>, scalar_prefetch = 0 : i64, scratch_operands = 0 : i64, tpu.core_type = #tpu.core_type<tc>, window_params = [{transform_indices = @transform_0, window_bounds = array<i64: 16, 64>}, {transform_indices = @transform_1, window_bounds = array<i64: 16, 64>}, {transform_indices = @transform_2, window_bounds = array<i64: 16, 2>}, {pipeline_mode = #tpu.pipeline_mode<synchronous>, transform_indices = @transform_3, window_bounds = array<i64: 64, 32>}, {pipeline_mode = #tpu.pipeline_mode<synchronous>, transform_indices = @transform_4, window_bounds = array<i64: 1, 32>}, {pipeline_mode = #tpu.pipeline_mode<synchronous>, transform_indices = @transform_5, window_bounds = array<i64: 32, 16>}, {pipeline_mode = #tpu.pipeline_mode<synchronous>, transform_indices = @transform_6, window_bounds = array<i64: 1, 16>}, {pipeline_mode = #tpu.pipeline_mode<synchronous>, transform_indices = @transform_7, window_bounds = array<i64: 64, 32>}, {pipeline_mode = #tpu.pipeline_mode<synchronous>, transform_indices = @transform_8, window_bounds = array<i64: 1, 32>}, {pipeline_mode = #tpu.pipeline_mode<synchronous>, transform_indices = @transform_9, window_bounds = array<i64: 32, 16>}, {pipeline_mode = #tpu.pipeline_mode<synchronous>, transform_indices = @transform_10, window_bounds = array<i64: 1, 16>}, {pipeline_mode = #tpu.pipeline_mode<synchronous>, transform_indices = @transform_11, window_bounds = array<i64: 16, 32>}, {pipeline_mode = #tpu.pipeline_mode<synchronous>, transform_indices = @transform_12, window_bounds = array<i64: 16, 2>}, {pipeline_mode = #tpu.pipeline_mode<synchronous>, transform_indices = @transform_13, window_bounds = array<i64: 16, 2>}, {pipeline_mode = #tpu.pipeline_mode<synchronous>, transform_indices = @transform_14, window_bounds = array<i64: 1, 2>}, {pipeline_mode = #tpu.pipeline_mode<synchronous>, transform_indices = @transform_15, window_bounds = array<i64: 32, 2>}, {transform_indices = @transform_16, window_bounds = array<i64: 16, 2>}, {transform_indices = @transform_17, window_bounds = array<i64: 1, 1, 1>}]} {
    %c0 = arith.constant 0 : index
    %c0_0 = arith.constant 0 : index
    %0 = vector.load %arg1[%c0, %c0_0] : memref<16x64xbf16, #tpu.memory_space<vmem>>, vector<16x64xbf16>
    %c0_1 = arith.constant 0 : index
    %c0_2 = arith.constant 0 : index
    %1 = vector.load %arg4[%c0_1, %c0_2] : memref<64x32xbf16, #tpu.memory_space<vmem>>, vector<64x32xbf16>
    %cst = arith.constant dense<0.000000e+00> : vector<16x32xf32>
    %2 = tpu.matmul %0, %1, %cst {dimension_numbers = #tpu.dot_dimension_numbers<[1], [0], [0], [1], [0, 0, 1, 1], [], []>} : vector<16x64xbf16>, vector<64x32xbf16>, vector<16x32xf32> -> vector<16x32xf32>
    %c0_3 = arith.constant 0 : index
    %c0_4 = arith.constant 0 : index
    %3 = vector.load %arg5[%c0_3, %c0_4] : memref<1x32xf32, #tpu.memory_space<vmem>>, vector<1x32xf32>
    %4 = vector.broadcast %3 : vector<1x32xf32> to vector<16x32xf32>
    %5 = arith.addf %2, %4 : vector<16x32xf32>
    %cst_5 = arith.constant 0.000000e+00 : f32
    %6 = vector.broadcast %cst_5 : f32 to vector<16x32xf32>
    %7 = arith.maximumf %5, %6 : vector<16x32xf32>
    %8 = arith.truncf %7 : vector<16x32xf32> to vector<16x32xbf16>
    %c0_6 = arith.constant 0 : index
    %c0_7 = arith.constant 0 : index
    %9 = vector.load %arg6[%c0_6, %c0_7] : memref<32x16xbf16, #tpu.memory_space<vmem>>, vector<32x16xbf16>
    %cst_8 = arith.constant dense<0.000000e+00> : vector<16x16xf32>
    %10 = tpu.matmul %8, %9, %cst_8 {dimension_numbers = #tpu.dot_dimension_numbers<[1], [0], [0], [1], [0, 0, 1, 1], [], []>} : vector<16x32xbf16>, vector<32x16xbf16>, vector<16x16xf32> -> vector<16x16xf32>
    %c0_9 = arith.constant 0 : index
    %c0_10 = arith.constant 0 : index
    %11 = vector.load %arg7[%c0_9, %c0_10] : memref<1x16xf32, #tpu.memory_space<vmem>>, vector<1x16xf32>
    %12 = vector.broadcast %11 : vector<1x16xf32> to vector<16x16xf32>
    %13 = arith.addf %10, %12 : vector<16x16xf32>
    %cst_11 = arith.constant 0.000000e+00 : f32
    %14 = vector.broadcast %cst_11 : f32 to vector<16x16xf32>
    %15 = arith.maximumf %13, %14 : vector<16x16xf32>
    %c0_12 = arith.constant 0 : index
    %c0_13 = arith.constant 0 : index
    %16 = vector.load %arg2[%c0_12, %c0_13] : memref<16x64xbf16, #tpu.memory_space<vmem>>, vector<16x64xbf16>
    %c0_14 = arith.constant 0 : index
    %c0_15 = arith.constant 0 : index
    %17 = vector.load %arg8[%c0_14, %c0_15] : memref<64x32xbf16, #tpu.memory_space<vmem>>, vector<64x32xbf16>
    %cst_16 = arith.constant dense<0.000000e+00> : vector<16x32xf32>
    %18 = tpu.matmul %16, %17, %cst_16 {dimension_numbers = #tpu.dot_dimension_numbers<[1], [0], [0], [1], [0, 0, 1, 1], [], []>} : vector<16x64xbf16>, vector<64x32xbf16>, vector<16x32xf32> -> vector<16x32xf32>
    %c0_17 = arith.constant 0 : index
    %c0_18 = arith.constant 0 : index
    %19 = vector.load %arg9[%c0_17, %c0_18] : memref<1x32xf32, #tpu.memory_space<vmem>>, vector<1x32xf32>
    %20 = vector.broadcast %19 : vector<1x32xf32> to vector<16x32xf32>
    %21 = arith.addf %18, %20 : vector<16x32xf32>
    %cst_19 = arith.constant 0.000000e+00 : f32
    %22 = vector.broadcast %cst_19 : f32 to vector<16x32xf32>
    %23 = arith.maximumf %21, %22 : vector<16x32xf32>
    %24 = arith.truncf %23 : vector<16x32xf32> to vector<16x32xbf16>
    %c0_20 = arith.constant 0 : index
    %c0_21 = arith.constant 0 : index
    %25 = vector.load %arg10[%c0_20, %c0_21] : memref<32x16xbf16, #tpu.memory_space<vmem>>, vector<32x16xbf16>
    %cst_22 = arith.constant dense<0.000000e+00> : vector<16x16xf32>
    %26 = tpu.matmul %24, %25, %cst_22 {dimension_numbers = #tpu.dot_dimension_numbers<[1], [0], [0], [1], [0, 0, 1, 1], [], []>} : vector<16x32xbf16>, vector<32x16xbf16>, vector<16x16xf32> -> vector<16x16xf32>
    %c0_23 = arith.constant 0 : index
    %c0_24 = arith.constant 0 : index
    %27 = vector.load %arg11[%c0_23, %c0_24] : memref<1x16xf32, #tpu.memory_space<vmem>>, vector<1x16xf32>
    %28 = vector.broadcast %27 : vector<1x16xf32> to vector<16x16xf32>
    %29 = arith.addf %26, %28 : vector<16x16xf32>
    %cst_25 = arith.constant 0.000000e+00 : f32
    %30 = vector.broadcast %cst_25 : f32 to vector<16x16xf32>
    %31 = arith.maximumf %29, %30 : vector<16x16xf32>
    %32 = arith.truncf %15 : vector<16x16xf32> to vector<16x16xbf16>
    %33 = arith.truncf %31 : vector<16x16xf32> to vector<16x16xbf16>
    %c0_26 = arith.constant 0 : index
    %c0_27 = arith.constant 0 : index
    %34 = vector.load %arg12[%c0_26, %c0_27] : memref<16x32xbf16, #tpu.memory_space<vmem>>, vector<16x32xbf16>
    %cst_28 = arith.constant dense<0.000000e+00> : vector<16x32xf32>
    %35 = tpu.matmul %32, %34, %cst_28 {dimension_numbers = #tpu.dot_dimension_numbers<[1], [0], [0], [1], [0, 0, 1, 1], [], []>} : vector<16x16xbf16>, vector<16x32xbf16>, vector<16x32xf32> -> vector<16x32xf32>
    %36 = tpu.concatenate %31, %31 in 1 : vector<16x16xf32>, vector<16x16xf32> -> vector<16x32xf32>
    %37 = arith.mulf %35, %36 : vector<16x32xf32>
    %c0_29 = arith.constant 0 : index
    %c0_30 = arith.constant 0 : index
    %38 = vector.load %arg16[%c0_29, %c0_30] : memref<32x2xf32, #tpu.memory_space<vmem>>, vector<32x2xf32>
    %cst_31 = arith.constant dense<0.000000e+00> : vector<16x2xf32>
    %39 = tpu.matmul %37, %38, %cst_31 {dimension_numbers = #tpu.dot_dimension_numbers<[1], [0], [0], [1], [0, 0, 1, 1], [], []>} : vector<16x32xf32>, vector<32x2xf32>, vector<16x2xf32> -> vector<16x2xf32>
    %c0_32 = arith.constant 0 : index
    %c0_33 = arith.constant 0 : index
    %40 = vector.load %arg13[%c0_32, %c0_33] : memref<16x2xbf16, #tpu.memory_space<vmem>>, vector<16x2xbf16>
    %cst_34 = arith.constant dense<0.000000e+00> : vector<16x2xf32>
    %41 = tpu.matmul %32, %40, %cst_34 {dimension_numbers = #tpu.dot_dimension_numbers<[1], [0], [0], [1], [0, 0, 1, 1], [], []>} : vector<16x16xbf16>, vector<16x2xbf16>, vector<16x2xf32> -> vector<16x2xf32>
    %42 = arith.addf %39, %41 : vector<16x2xf32>
    %c0_35 = arith.constant 0 : index
    %c0_36 = arith.constant 0 : index
    %43 = vector.load %arg14[%c0_35, %c0_36] : memref<16x2xbf16, #tpu.memory_space<vmem>>, vector<16x2xbf16>
    %cst_37 = arith.constant dense<0.000000e+00> : vector<16x2xf32>
    %44 = tpu.matmul %33, %43, %cst_37 {dimension_numbers = #tpu.dot_dimension_numbers<[1], [0], [0], [1], [0, 0, 1, 1], [], []>} : vector<16x16xbf16>, vector<16x2xbf16>, vector<16x2xf32> -> vector<16x2xf32>
    %45 = arith.addf %42, %44 : vector<16x2xf32>
    %c0_38 = arith.constant 0 : index
    %c0_39 = arith.constant 0 : index
    %46 = vector.load %arg15[%c0_38, %c0_39] : memref<1x2xf32, #tpu.memory_space<vmem>>, vector<1x2xf32>
    %47 = vector.broadcast %46 : vector<1x2xf32> to vector<16x2xf32>
    %48 = arith.addf %45, %47 : vector<16x2xf32>
    %c0_40 = arith.constant 0 : index
    %c0_41 = arith.constant 0 : index
    %49 = vector.load %arg17[%c0_40, %c0_41] : memref<16x2xf32, #tpu.memory_space<vmem>>, vector<16x2xf32>
    tpu.vector_store %arg17[%c0_40, %c0_41], %48 {strides = array<i32>} : memref<16x2xf32, #tpu.memory_space<vmem>>, vector<16x2xf32>,
    %cst_42 = arith.constant dense<0xFF800000> : vector<16xf32>
    %50 = vector.multi_reduction <maximumf>, %48, %cst_42 [1] : vector<16x2xf32> to vector<16xf32>
    %51 = vector.shape_cast %50 : vector<16xf32> to vector<16x1xf32>
    %52 = vector.broadcast %51 : vector<16x1xf32> to vector<16x2xf32>
    %53 = arith.subf %48, %52 : vector<16x2xf32>
    %54 = math.exp %53 : vector<16x2xf32>
    %cst_43 = arith.constant dense<0.000000e+00> : vector<16xf32>
    %55 = vector.multi_reduction <add>, %54, %cst_43 [1] : vector<16x2xf32> to vector<16xf32>
    %56 = vector.shape_cast %55 : vector<16xf32> to vector<16x1xf32>
    %57 = math.log %56 : vector<16x1xf32>
    %c0_44 = arith.constant 0 : index
    %c0_45 = arith.constant 0 : index
    %58 = vector.load %arg3[%c0_44, %c0_45] : memref<16x2xf32, #tpu.memory_space<vmem>>, vector<16x2xf32>
    %59 = arith.mulf %53, %58 : vector<16x2xf32>
    %cst_46 = arith.constant dense<0.000000e+00> : vector<16xf32>
    %60 = vector.multi_reduction <add>, %59, %cst_46 [1] : vector<16x2xf32> to vector<16xf32>
    %61 = vector.shape_cast %60 : vector<16xf32> to vector<16x1xf32>
    %62 = arith.subf %57, %61 : vector<16x1xf32>
    %c16_i32 = arith.constant 16 : i32
    %63 = arith.muli %arg0, %c16_i32 : i32
    %64 = tpu.iota {dimensions = array<i32: 0>} : vector<16x1xi32>
    %65 = vector.broadcast %63 : i32 to vector<16x1xi32>
    %66 = arith.addi %65, %64 : vector<16x1xi32>
    %c16_i32_47 = arith.constant 16 : i32
    %67 = vector.broadcast %c16_i32_47 : i32 to vector<16x1xi32>
    %68 = arith.cmpi slt, %66, %67 : vector<16x1xi32>
    %69 = arith.extui %68 : vector<16x1xi1> to vector<16x1xi32>
    %70 = arith.sitofp %69 : vector<16x1xi32> to vector<16x1xf32>
    %71 = arith.mulf %62, %70 : vector<16x1xf32>
    %72 = vector.shape_cast %71 : vector<16x1xf32> to vector<1x16x1xf32>
    %cst_48 = arith.constant dense<0.000000e+00> : vector<1xf32>
    %73 = vector.multi_reduction <add>, %72, %cst_48 [1, 2] : vector<1x16x1xf32> to vector<1xf32>
    %74 = vector.shape_cast %73 : vector<1xf32> to vector<1x1x1xf32>
    %75 = vector.extract %74[0, 0, 0] : f32 from vector<1x1x1xf32>
    %76 = vector.broadcast %75 : f32 to vector<1x1x1xf32>
    %c0_49 = arith.constant 0 : index
    %c0_50 = arith.constant 0 : index
    %c0_51 = arith.constant 0 : index
    %77 = vector.load %arg18[%c0_49, %c0_50, %c0_51] : memref<1x1x1xf32, #tpu.memory_space<vmem>>, vector<1x1x1xf32>
    tpu.vector_store %arg18[%c0_49, %c0_50, %c0_51], %76 {strides = array<i32>} : memref<1x1x1xf32, #tpu.memory_space<vmem>>, vector<1x1x1xf32>,
    return
  }
  func.func @transform_0(%arg0: i32) -> (i32, i32) {
    %c0_i32 = arith.constant 0 : i32
    %c0_i32_0 = arith.constant 0 : i32
    return %arg0, %c0_i32 : i32, i32
  }
  func.func @transform_1(%arg0: i32) -> (i32, i32) {
    %c0_i32 = arith.constant 0 : i32
    %c0_i32_0 = arith.constant 0 : i32
    return %arg0, %c0_i32 : i32, i32
  }
  func.func @transform_2(%arg0: i32) -> (i32, i32) {
    %c0_i32 = arith.constant 0 : i32
    %c0_i32_0 = arith.constant 0 : i32
    return %arg0, %c0_i32 : i32, i32
  }
  func.func @transform_3(%arg0: i32) -> (i32, i32) {
    %c0_i32 = arith.constant 0 : i32
    %c0_i32_0 = arith.constant 0 : i32
    %c0_i32_1 = arith.constant 0 : i32
    return %c0_i32, %c0_i32_0 : i32, i32
  }
  func.func @transform_4(%arg0: i32) -> (i32, i32) {
    %c0_i32 = arith.constant 0 : i32
    %c0_i32_0 = arith.constant 0 : i32
    %c0_i32_1 = arith.constant 0 : i32
    return %c0_i32, %c0_i32_0 : i32, i32
  }
  func.func @transform_5(%arg0: i32) -> (i32, i32) {
    %c0_i32 = arith.constant 0 : i32
    %c0_i32_0 = arith.constant 0 : i32
    %c0_i32_1 = arith.constant 0 : i32
    return %c0_i32, %c0_i32_0 : i32, i32
  }
  func.func @transform_6(%arg0: i32) -> (i32, i32) {
    %c0_i32 = arith.constant 0 : i32
    %c0_i32_0 = arith.constant 0 : i32
    %c0_i32_1 = arith.constant 0 : i32
    return %c0_i32, %c0_i32_0 : i32, i32
  }
  func.func @transform_7(%arg0: i32) -> (i32, i32) {
    %c0_i32 = arith.constant 0 : i32
    %c0_i32_0 = arith.constant 0 : i32
    %c0_i32_1 = arith.constant 0 : i32
    return %c0_i32, %c0_i32_0 : i32, i32
  }
  func.func @transform_8(%arg0: i32) -> (i32, i32) {
    %c0_i32 = arith.constant 0 : i32
    %c0_i32_0 = arith.constant 0 : i32
    %c0_i32_1 = arith.constant 0 : i32
    return %c0_i32, %c0_i32_0 : i32, i32
  }
  func.func @transform_9(%arg0: i32) -> (i32, i32) {
    %c0_i32 = arith.constant 0 : i32
    %c0_i32_0 = arith.constant 0 : i32
    %c0_i32_1 = arith.constant 0 : i32
    return %c0_i32, %c0_i32_0 : i32, i32
  }
  func.func @transform_10(%arg0: i32) -> (i32, i32) {
    %c0_i32 = arith.constant 0 : i32
    %c0_i32_0 = arith.constant 0 : i32
    %c0_i32_1 = arith.constant 0 : i32
    return %c0_i32, %c0_i32_0 : i32, i32
  }
  func.func @transform_11(%arg0: i32) -> (i32, i32) {
    %c0_i32 = arith.constant 0 : i32
    %c0_i32_0 = arith.constant 0 : i32
    %c0_i32_1 = arith.constant 0 : i32
    return %c0_i32, %c0_i32_0 : i32, i32
  }
  func.func @transform_12(%arg0: i32) -> (i32, i32) {
    %c0_i32 = arith.constant 0 : i32
    %c0_i32_0 = arith.constant 0 : i32
    %c0_i32_1 = arith.constant 0 : i32
    return %c0_i32, %c0_i32_0 : i32, i32
  }
  func.func @transform_13(%arg0: i32) -> (i32, i32) {
    %c0_i32 = arith.constant 0 : i32
    %c0_i32_0 = arith.constant 0 : i32
    %c0_i32_1 = arith.constant 0 : i32
    return %c0_i32, %c0_i32_0 : i32, i32
  }
  func.func @transform_14(%arg0: i32) -> (i32, i32) {
    %c0_i32 = arith.constant 0 : i32
    %c0_i32_0 = arith.constant 0 : i32
    %c0_i32_1 = arith.constant 0 : i32
    return %c0_i32, %c0_i32_0 : i32, i32
  }
  func.func @transform_15(%arg0: i32) -> (i32, i32) {
    %c0_i32 = arith.constant 0 : i32
    %c0_i32_0 = arith.constant 0 : i32
    %c0_i32_1 = arith.constant 0 : i32
    return %c0_i32, %c0_i32_0 : i32, i32
  }
  func.func @transform_16(%arg0: i32) -> (i32, i32) {
    %c0_i32 = arith.constant 0 : i32
    %c0_i32_0 = arith.constant 0 : i32
    return %arg0, %c0_i32 : i32, i32
  }
  func.func @transform_17(%arg0: i32) -> (i32, i32, i32) {
    %c0_i32 = arith.constant 0 : i32
    %c0_i32_0 = arith.constant 0 : i32
    %c0_i32_1 = arith.constant 0 : i32
    return %arg0, %c0_i32, %c0_i32_0 : i32, i32, i32
  }
}

</mosaic_0001>

<bundles_post_ra>
// kernel: tpu_custom_call.1
= control target key start
LH: loop header
LB: loop body
LE: loop exit
PB: predicated region body
PF: predicated region fallthrough
CT: control target
= control target key end

     0   :  { %s1149_s0 = inlined_call_operand.vmem [shape: bf16[16,64], index: 0, kind: input, shape index: {}]   ;;  %s1150_s1 = inlined_call_operand.vmem [shape: bf16[16,64], index: 1, kind: input, shape index: {}]   ;;  %s1151_s2 = inlined_call_operand.vmem [shape: f32[16,2], index: 2, kind: input, shape index: {}]   ;;  %s1152_s3 = inlined_call_operand.vmem [shape: bf16[64,32], index: 3, kind: input, shape index: {}]   ;;  %s1153_s4 = inlined_call_operand.vmem [shape: f32[1,32], index: 4, kind: input, shape index: {}]   ;;  %s1154_s5 = inlined_call_operand.vmem [shape: bf16[32,16], index: 5, kind: input, shape index: {}]   ;;  %s1155_s6 = inlined_call_operand.vmem [shape: f32[1,16], index: 6, kind: input, shape index: {}]   ;;  %s1156_s7 = inlined_call_operand.vmem [shape: bf16[64,32], index: 7, kind: input, shape index: {}]   ;;  %s1157_s8 = inlined_call_operand.vmem [shape: f32[1,32], index: 8, kind: input, shape index: {}]   ;;  %s1158_s9 = inlined_call_operand.vmem [shape: bf16[32,16], index: 9, kind: input, shape index: {}]   ;;  %s1159_s10 = inlined_call_operand.vmem [shape: f32[1,16], index: 10, kind: input, shape index: {}]   ;;  %s1160_s11 = inlined_call_operand.vmem [shape: bf16[16,32], index: 11, kind: input, shape index: {}]   ;;  %s1161_s12 = inlined_call_operand.vmem [shape: bf16[16,2], index: 12, kind: input, shape index: {}]   ;;  %s1162_s13 = inlined_call_operand.vmem [shape: bf16[16,2], index: 13, kind: input, shape index: {}]   ;;  %s1163_s14 = inlined_call_operand.vmem [shape: f32[1,2], index: 14, kind: input, shape index: {}]   ;;  %s1164_s15 = inlined_call_operand.vmem [shape: f32[32,2], index: 15, kind: input, shape index: {}]   ;;  %s1165_s16 = inlined_call_operand.vmem [shape: f32[16,2], index: 16, kind: output, shape index: {0}]   ;;  %s1166_s17 = inlined_call_operand.hbm [shape: f32[1,1,1], index: 17, kind: output, shape index: {1}]  }
   0x1   :  { %1167 = sst [smem:[#allocation5_spill]] %s1149_s0 }
   0x2   :  { %1168 = sst [smem:[#allocation6_spill]] %s1150_s1 }
   0x3   :  { %v867_v0 = vld [vmem:[%s1152_s3 + $0x18] sm:$0xff]   ;;  %v914_v1 = vmov 0.0   ;;  %v868_v2 = vld [vmem:[%s1152_s3 + $0x10] sm:$0xff]   ;;  %vm915_vm0 = vmmov 0   ;;  %v869_v3 = vld [vmem:[%s1152_s3 + $0x8] sm:$0xff]   ;;  %s1169_s1 = sld [smem:[#allocation5_spill]] }
   0x4   :  { %792 = vmatprep.subr.bf16.mxu0 %v914_v1  ;;  %804 = vmatprep.subr.bf16.mxu1 %v914_v1  ;;  %v870_v4 = vld [vmem:[%s1152_s3] sm:$0xff]  }
   0x5   :  { %793 = vmatpush3.bf16.msra.mxu0 %v867_v0  ;;  %800 = vmatprep.mubr.msk.bf16.mxu0 %vm915_vm0, %v914_v1 }
   0x6   :  { %794 = vmatprep.subr.bf16.mxu0 %v914_v1  ;;  %808 = vmatprep.mubr.msk.bf16.mxu1 %vm915_vm0, %v914_v1 }
   0x9   :  { %795 = vmatpush3.bf16.msra.mxu0 %v868_v2  ;;  %v871_v5 = vld [vmem:[%s1169_s1] sm:$0xff]  }
   0xa   :  { %796 = vmatprep.subr.bf16.mxu0 %v914_v1 }
   0xd   :  { %797 = vmatpush3.bf16.msra.mxu0 %v869_v3 }
   0xe   :  { %798 = vmatprep.subr.bf16.mxu0 %v914_v1 }
   0xf   :  { %23 = vsyncpa [#allocation3], 0  ;;  %vm103_vm1 = vcmask 523264   ;;  %v872_v6 = vld [vmem:[%s1154_s5 + $0x8] sm:$0xff]   ;;  %v873_v7 = vld [vmem:[%s1154_s5] sm:$0xff]   ;;  %vm174_vm2 = vcmask 261120  }
  0x10   :  { %805 = vmatpush3.bf16.msra.mxu1 %v872_v6  ;;  %v733_v8 = vld [vmem:[%s1153_s4] ss:$0 sm:$0xff]  ;;  %v874_v17 = vld [vmem:[%s1156_s7 + $0x18] sm:$0xff]   ;;  %v875_v19 = vld [vmem:[%s1156_s7 + $0x10] sm:$0xff]   ;;  %s1170_s19 = sld [smem:[#allocation6_spill]]  ;;  %vm393_vm3 = vcmask 130048  }
  0x11   :  { %799 = vmatpush3.bf16.msra.mxu0 %v870_v4  ;;  %806 = vmatprep.subr.bf16.mxu1 %v914_v1  ;;  %v876_v20 = vld [vmem:[%s1156_s7 + $0x8] sm:$0xff]   ;;  %v877_v21 = vld [vmem:[%s1156_s7] sm:$0xff]   ;;  %v453_v48 = vld [vmem:[%s1164_s15 + $0x18] sm:$0xff]  ;;  %vm647_vm4 = vcmask 15360   ;;  %vm699_vm5 = vcmask 7168   ;;  %vm713_vm6 = vcmask 0  }
  0x12   :  { %824 = vmatprep.subr.bf16.mxu0 %v914_v1  ;;  %v879_v23 = vld [vmem:[%s1161_s12] sm:$0xff]   ;;  %v880_v24 = vld [vmem:[%s1158_s9 + $0x8] sm:$0xff]   ;;  %v452_v53 = vld [vmem:[%s1164_s15 + $0x10] sm:$0xff] }
  0x13   :  { %v881_v25 = vld [vmem:[%s1158_s9] sm:$0xff]   ;;  %v451_v54 = vld [vmem:[%s1164_s15 + $0x8] sm:$0xff] }
  0x14   :  { %801 = vmatmul.mubr.msk.bf16.vlgmr.msra.gmra.mxu0 %vm103_vm1, %v871_v5  ;;  %807 = vmatpush3.bf16.msra.mxu1 %v873_v7  ;;  %v740_v26 = vld [vmem:[%s1155_s6] ss:$0 sm:$0xff] }
  0x15   :  { %828 = vmatprep.mubr.msk.bf16.mxu0 %vm915_vm0, %v914_v1  ;;  %812 = vmatprep.subr.bf16.mxu1 %v914_v1  ;;  %v744_v36 = vld [vmem:[%s1157_s8] ss:$0 sm:$0xff] }
  0x16   :  { %v878_v22 = vld [vmem:[%s1170_s19] sm:$0xff]   ;;  %825 = vmatpush3.bf16.msra.mxu0 %v880_v24  ;;  %s916_s19 = smov 16  }
  0x17   :  { %826 = vmatprep.subr.bf16.mxu0 %v914_v1  ;;  %v882_v45 = vld [vmem:[%s1160_s11] sm:$0xff]  }
  0x18   :  { %v883_v47 = vld [vmem:[%s1162_s13] sm:$0xff]  }
  0x19   :  { %v450_v55 = vld [vmem:[%s1164_s15] sm:$0xff] }
  0x1a   :  { %827 = vmatpush3.bf16.msra.mxu0 %v881_v25  ;;  %v751_v56 = vld [vmem:[%s1159_s10] ss:$0 sm:$0xff] }
  0x1b   :  { %832 = vmatprep.subr.bf16.mxu0 %v914_v1 }
  0xd4   :  { %v141_v9 = vpop.f32.mrf.mxu0 }
  0xd5   :  { %v142_v11 = vadd.f32 %v733_v8, %v141_v9 }
  0xd6   :  { %v802_v10 = vpop.f32.mrf.mxu0 }
  0xd7   :  { %v148_v15 = vmax.f32 %v142_v11, 0.0 }
  0xd8   :  { %v144_v12 = vpop.f32.mrf.mxu0 }
  0xd9   :  { %v145_v13 = vadd.f32 %v733_v8, %v144_v12 }
  0xda   :  { %v803_v14 = vpop.f32.mrf.mxu0 }
  0xdb   :  { %v149_v16 = vmax.f32 %v145_v13, 0.0 }
  0xdd   :  { %v150_v18 = vpack.c.bf16 %v149_v16, %v148_v15 }
  0xdf   :  { %809 = vmatmul.mubr.msk.bf16.vlgmr.msra.gmra.mxu1 %vm174_vm2, %v150_v18  ;;  %v763_v18 = vld [vmem:[%s1163_s14] ss:$0 sm:$0xff] }
  0xe0   :  { %813 = vmatpush3.bf16.msra.mxu1 %v874_v17  ;;  %820 = vmatprep.mubr.msk.bf16.mxu1 %vm915_vm0, %v914_v1 }
  0xe1   :  { %814 = vmatprep.subr.bf16.mxu1 %v914_v1 }
  0xe4   :  { %815 = vmatpush3.bf16.msra.mxu1 %v875_v19 }
  0xe5   :  { %816 = vmatprep.subr.bf16.mxu1 %v914_v1 }
  0xe8   :  { %817 = vmatpush3.bf16.msra.mxu1 %v876_v20 }
  0xe9   :  { %818 = vmatprep.subr.bf16.mxu1 %v914_v1 }
  0xec   :  { %819 = vmatpush3.bf16.msra.mxu1 %v877_v21 }
  0xed   :  { %838 = vmatprep.subr.bf16.mxu1 %v914_v1 }
  0xef   :  { %821 = vmatmul.mubr.msk.bf16.vlgmr.msra.gmra.mxu1 %vm103_vm1, %v878_v22 }
  0xf0   :  { %840 = vmatprep.mubr.msk.bf16.mxu1 %vm915_vm0, %v914_v1  ;;  %839 = vmatpush3.bf16.msra.mxu1 %v879_v23 }
  0xf1   :  { %855 = vmatprep.subr.bf16.mxu1 %v914_v1 }
 0x19f   :  { %v212_v27 = vpop.f32.mrf.mxu1 }
 0x1a0   :  { %v213_v29 = vadd.f32 %v740_v26, %v212_v27 }
 0x1a1   :  { %v810_v28 = vpop.f32.mrf.mxu1 }
 0x1a2   :  { %v219_v33 = vmax.f32 %v213_v29, 0.0 }
 0x1a3   :  { %v215_v30 = vpop.f32.mrf.mxu1 }
 0x1a4   :  { %v216_v31 = vadd.f32 %v740_v26, %v215_v30 }
 0x1a5   :  { %v811_v32 = vpop.f32.mrf.mxu1 }
 0x1a6   :  { %v220_v34 = vmax.f32 %v216_v31, 0.0 }
 0x1a8   :  { %v383_v35 = vpack.c.bf16 %v220_v34, %v219_v33 }
 0x1aa   :  { %841 = vmatmul.mubr.msk.bf16.vlgmr.msra.gmra.mxu1 %vm393_vm3, %v383_v35 }
 0x1ab   :  { %857 = vmatprep.mubr.msk.bf16.mxu1 %vm915_vm0, %v914_v1  ;;  %856 = vmatpush3.bf16.msra.mxu1 %v883_v47 }
 0x1af   :  { %v304_v37 = vpop.f32.mrf.mxu1 }
 0x1b0   :  { %v305_v39 = vadd.f32 %v744_v36, %v304_v37 }
 0x1b1   :  { %v822_v38 = vpop.f32.mrf.mxu1 }
 0x1b2   :  { %v311_v43 = vmax.f32 %v305_v39, 0.0  ;;  %v673_v39 = vld [vmem:[%s1151_s2 + $0x8] sm:$0xff] }
 0x1b3   :  { %v307_v40 = vpop.f32.mrf.mxu1 }
 0x1b4   :  { %v308_v41 = vadd.f32 %v744_v36, %v307_v40 }
 0x1b5   :  { %v823_v42 = vpop.f32.mrf.mxu1 }
 0x1b6   :  { %v312_v44 = vmax.f32 %v308_v41, 0.0 }
 0x1b8   :  { %v313_v46 = vpack.c.bf16 %v312_v44, %v311_v43 }
 0x1ba   :  { %829 = vmatmul.mubr.msk.bf16.vlgmr.msra.gmra.mxu0 %vm174_vm2, %v313_v46 }
 0x1bb   :  { %833 = vmatpush3.bf16.msra.mxu0 %v882_v45  ;;  %834 = vmatprep.mubr.msk.bf16.mxu0 %vm915_vm0, %v914_v1 }
 0x1bc   :  { %844 = vmatprep.subr.mxu0 %v453_v48 }
 0x1c2   :  { %835 = vmatmul.mubr.msk.bf16.vlgmr.msra.gmra.mxu0 %vm393_vm3, %v383_v35  ;;  %v672_v35 = vld [vmem:[%s1151_s2] sm:$0xff]  ;;  %s917_s2 = smov [#allocation2]  }
 0x1c3   :  { %845 = vmatpush3.msra.mxu0 %v453_v48  ;;  %s723_s23 = sshll.u32 %s917_s2, 4  ;;  %s724_s23 = int_to_ptr.vmem [resolvable:$true] %s723_s23 }
 0x1c4   :  { %846 = vmatprep.subr.mxu0 %v452_v53  ;;  %s892_s9 = scalar_lea.vmem %s724_s23, 16  ;;  %s896_s12 = scalar_lea.vmem %s724_s23, 32 }
 0x1c5   :  { %847 = vmatpush3.msra.mxu0 %v452_v53  ;;  %p893_p0 = scmp.ne.s32.totalorder %s724_s23, %s892_s9  ;;  %p897_p1 = scmp.lt.s32.totalorder %s724_s23, %s724_s23 }
 0x1c6   :  { %848 = vmatprep.subr.mxu0 %v451_v54  ;;  %p898_p2 = scmp.lt.s32.totalorder %s896_s12, %s892_s9 }
 0x1c7   :  { %849 = vmatpush3.msra.mxu0 %v451_v54 }
 0x1c8   :  { %850 = vmatprep.subr.mxu0 %v450_v55  ;;  %p899_p3 = por %p898_p2, %p897_p1 }
 0x1c9   :  { %851 = vmatpush3.msra.mxu0 %v450_v55 }
 0x1ca   :  { %p900_p4 = pnand %p899_p3, %p893_p0 }
 0x26a   :  { %v496_v49 = vpop.f32.mrf.mxu1 }
 0x26c   :  { %v842_v50 = vpop.f32.mrf.mxu1 }
 0x26e   :  { %v499_v51 = vpop.f32.mrf.mxu1 }
 0x270   :  { %v843_v52 = vpop.f32.mrf.mxu1 }
 0x27a   :  { %v374_v57 = vpop.f32.mrf.mxu0 }
 0x27b   :  { %v375_v58 = vadd.f32 %v751_v56, %v374_v57 }
 0x27c   :  { %v830_v59 = vpop.f32.mrf.mxu0 }
 0x27d   :  { %v381_v60 = vmax.f32 %v375_v58, 0.0 }
 0x27e   :  { %v377_v61 = vpop.f32.mrf.mxu0 }
 0x27f   :  { %v378_v62 = vadd.f32 %v751_v56, %v377_v61  ;;  %440 = vrot.lane.b32.xlu0 %v381_v60, %s916_s19 }
 0x280   :  { %v831_v63 = vpop.f32.mrf.mxu0 }
 0x281   :  { %v382_v0 = vmax.f32 %v378_v62, 0.0 }
 0x282   :  { %v431_v1 = vpop.f32.mrf.mxu0 }
 0x283   :  { %v384_v2 = vpack.c.bf16 %v382_v0, %v381_v60  ;;  %442 = vrot.lane.b32.xlu0 %v382_v0, %s916_s19 }
 0x284   :  { %v836_v3 = vpop.f32.mrf.mxu0 }
 0x285   :  { %858 = vmatmul.mubr.msk.bf16.vlgmr.msra.gmra.mxu1 %vm393_vm3, %v384_v2 }
 0x286   :  { %v434_v4 = vpop.f32.mrf.mxu0 }
 0x288   :  { %v837_v5 = vpop.f32.mrf.mxu0 }
 0x2f1   :  { %v441_v6 = vpop.permute.xlu0 %440 }
 0x2f2   :  { %v446_v7 = vsel %vm393_vm3, %v381_v60, %v441_v6 }
 0x2f3   :  { %v448_v8 = vmul.f32 %v446_v7, %v431_v1 }
 0x2f5   :  { %v443_v9 = vpop.permute.xlu0 %442  ;;  %852 = vmatprep.mubr.msk.f32.mxu0 %vm174_vm2, %v448_v8 }
 0x2f6   :  { %v447_v10 = vsel %vm393_vm3, %v382_v0, %v443_v9 }
 0x2f7   :  { %v449_v11 = vmul.f32 %v447_v10, %v434_v4 }
 0x2f9   :  { %853 = vmatmul.mubr.msk.f32.vlgmr.msra.gmra.mxu0 %vm174_vm2, %v449_v11 }
 0x345   :  { %v629_v12 = vpop.f32.mrf.mxu1 }
 0x347   :  { %v859_v13 = vpop.f32.mrf.mxu1 }
 0x349   :  { %v632_v14 = vpop.f32.mrf.mxu1 }
 0x34b   :  { %v860_v15 = vpop.f32.mrf.mxu1 }
 0x3b9   :  { %v854_v16 = vpop.f32.mrf.mxu0 }
 0x3ba   :  { %v581_v17 = vadd.f32 %v854_v16, %v499_v51 }
 0x3bb   :  { %v575_v19 = vpop.f32.mrf.mxu0 }
 0x3bc   :  { %v637_v20 = vadd.f32 %v632_v14, %v581_v17  ;;  %v576_v21 = vadd.f32 %v575_v19, %v496_v49 }
 0x3be   :  { %v646_v22 = vadd.f32 %v763_v18, %v637_v20  ;;  %v636_v23 = vadd.f32 %v629_v12, %v576_v21 }
 0x3c0   :  { %649 = vst.msk [vmem:[%s1165_s16 + $0x8] sm:$0xff] %vm647_vm4, %v646_v22  ;;  %v645_v24 = vadd.f32 %v763_v18, %v636_v23  ;;  %v653_v26 = vsel %vm647_vm4, %v646_v22, -inf }
 0x3c2   :  { %v650_v25 = vsel %vm647_vm4, %v645_v24, -inf  ;;  %648 = vst.msk [vmem:[%s1165_s16] sm:$0xff] %vm647_vm4, %v645_v24 }
 0x3c3   :  { %651 = vmax.xlane.f32.xlu1 %v650_v25 }
 0x3c7   :  { %654 = vmax.xlane.f32.xlu1 %v653_v26 }
 0x44c   :  { %v652_v27 = vpop.xlane.xlu1 %651 }
 0x44d   :  { %v656_v28 = vsub.f32 %v645_v24, %v652_v27 }
 0x44f   :  { %v658_v29 = vmul.f32 1.442695, %v656_v28  ;;  %v674_v38 = vmul.f32 %v672_v35, %v656_v28 }
 0x450   :  { %v655_v30 = vpop.xlane.xlu1 %654 }
 0x451   :  { %884 = vpow2.f32 %v658_v29  ;;  %v657_v31 = vsub.f32 %v646_v22, %v655_v30  ;;  %v676_v40 = vsel %vm647_vm4, %v674_v38, 0.0 }
 0x453   :  { %v660_v32 = vmul.f32 1.442695, %v657_v31  ;;  %v675_v41 = vmul.f32 %v673_v39, %v657_v31 }
 0x455   :  { %886 = vpow2.f32 %v660_v32  ;;  %v679_v42 = vsel %vm647_vm4, %v675_v41, 0.0 }
 0x45e   :  { %v885_v33 = vpop.eup %884 }
 0x45f   :  { %v662_v34 = vsel %vm647_vm4, %v885_v33, 0.0 }
 0x460   :  { %663 = vadd.xlane.f32.xlu0 %v662_v34 }
 0x462   :  { %v887_v36 = vpop.eup %886 }
 0x463   :  { %v665_v37 = vsel %vm647_vm4, %v887_v36, 0.0 }
 0x464   :  { %666 = vadd.xlane.f32.xlu1 %v665_v37 }
 0x468   :  { %677 = vadd.xlane.f32.xlu1 %v676_v40 }
 0x46c   :  { %680 = vadd.xlane.f32.xlu1 %v679_v42 }
 0x4e9   :  { %v664_v43 = vpop.xlane.xlu0 %663 }
 0x4ea   :  { %888 = vlog2.f32 %v664_v43 }
 0x4ed   :  { %v667_v44 = vpop.xlane.xlu1 %666 }
 0x4ee   :  { %890 = vlog2.f32 %v667_v44 }
 0x4f1   :  { %v678_v46 = vpop.xlane.xlu1 %677 }
 0x4f5   :  { %v681_v51 = vpop.xlane.xlu1 %680 }
 0x4f7   :  { %v889_v45 = vpop.eup %888 }
 0x4f8   :  { %v669_v47 = vmul.f32 0.6931472, %v889_v45 }
 0x4fa   :  { %v682_v49 = vsub.f32 %v669_v47, %v678_v46 }
 0x4fb   :  { %v891_v48 = vpop.eup %890 }
 0x4fc   :  { %v671_v50 = vmul.f32 0.6931472, %v891_v48  ;;  %v700_v53 = vsel %vm699_vm5, %v682_v49, 0.0 }
 0x4fe   :  { %v683_v52 = vsub.f32 %v671_v50, %v681_v51 }
 0x500   :  { %v701_v54 = vsel %vm699_vm5, %v683_v52, 0.0 }
 0x501   :  { %v702_v55 = vadd.f32 %v701_v54, %v700_v53 }
 0x503   :  { %703 = vadd.xlane.f32.xlu1 %v702_v55 }
 0x58c   :  { %v704_v56 = vpop.xlane.xlu1 %703 }
 0x58d   :  { %v705_v57 = vrot.slane %v704_v56, 4 }
 0x58f   :  { %v706_v58 = vadd.f32 %v705_v57, %v704_v56 }
 0x591   :  { %v707_v59 = vrot.slane %v706_v58, 2 }
 0x593   :  { %v708_v60 = vadd.f32 %v707_v59, %v706_v58 }
 0x595   :  { %v709_v61 = vrot.slane %v708_v60, 1 }
 0x597   :  { %v710_v62 = vadd.f32 %v709_v61, %v708_v60 }
 0x599   :  { %861 = vpush %v710_v62 }
 0x5ca   :  { %s862_s24 = spop %861 }
 0x5cb   :  { %v712_v63 = vstv %s862_s24 }
 0x5cc   :  { %714 = vst.msk [vmem:[#allocation2] sm:$0x1] %vm713_vm6, %v712_v63 }
 0x5cd   :  { %903 = shalt.err (!%p900_p4)
}
 0x5ce   :  { %726 = dma.vmem_to_hbm [thread:$0]  %s724_s23, 16, %s1166_s17, [#allocation3]  }
 0x5cf   :  { %912 = dma.done.wait [#allocation3], 16  }
 0x5d0   :  { %913 = vsyncadd [#allocation3], 4294967280 }
 0x5d1   :  { %732 = vsyncpa [#allocation3], 1 }

</bundles_post_ra>
